<compile_context>
chip_gen: v7x
topology: tpu7x:2x2x1
jax: 0.10.0
libtpu: 0.0.40
codegen_flags: <defaults>
</compile_context>

<pallas_src>
import functools

import jax
import jax.numpy as jnp
from jax import lax
from jax.experimental import pallas as pl
from jax.experimental.pallas import tpu as pltpu


_LANE = 128
_SUBLANE = 8
_TILE_CAP = 1024                       # 512-1024-row tiles ~85% HBM roofline
_TILE_VMEM_BUDGET = 16 * 1024 * 1024   # conservative working-set target (fits v5e default)
_VMEM_LIMIT_BYTES = 48 * 1024 * 1024   # < v7x 64 MiB physical, > v5e 16 MiB default scope


def _round_up(x, m):
    return (x + m - 1) // m * m


def _mlp_kernel(n_hidden, x_ref, *refs):
    """Fused MLP forward for one batch tile.

    refs = (w0, b0, ..., w_{n_hidden-1}, b_{n_hidden-1}, w_last, b_last, out_ref)
      hidden w_i : [d_in, d_out] (pre-transposed), b_i : [1, d_out]
      w_last     : [out_dim, d_last] (torch layout),  b_last : [out_dim, 1]
    The reference module applies dropout (identity in eval) followed by ReLU
    *before* each of the first nlayers-1 linears; the last linear has no
    preceding activation.
    """
    out_ref = refs[-1]
    params = refs[:-1]

    h = x_ref[...].astype(jnp.float32)            # [TILE_B, in_dim]
    for i in range(n_hidden):
        w = params[2 * i][...]                    # [d_in, d_out]
        b = params[2 * i + 1][...]                # [1, d_out]
        # TODO(synk): training-mode stochastic dropout not implemented; eval-mode identity used.
        h = jnp.maximum(h, 0.0)                   # activation_{i+1} = ReLU (before the linear)
        # Feature dims here are tiny (<=128); jnp.dot is latency- not
        # throughput-bound, which is fine at these shapes.
        h = jnp.dot(h, w, preferred_element_type=jnp.float32) + b

    w_last = params[2 * n_hidden][...]            # [out_dim, d_last]
    b_last = params[2 * n_hidden + 1][...]        # [out_dim, 1]
    # Final linear computed directly in transposed form so the store is
    # lane-dense (batch on the lane axis) instead of a masked 1-wide vst.
    out_t = lax.dot_general(w_last, h, (((1,), (1,)), ((), ())),
                            preferred_element_type=jnp.float32)   # [out_dim, TILE_B]
    out_ref[...] = (out_t + b_last).astype(out_ref.dtype)


def init_mlp_params(key, in_dim, out_dim, nlayers):
    """Deterministic parameter init matching nn.Linear layout.

    Returns a flat list [W0, b0, W1, b1, ...] with W_i of shape
    (out_features, in_features) and b_i of shape (out_features,),
    exactly as torch.nn.Linear stores them.
    """
    params = []
    dim1 = in_dim
    dims = []
    for _ in range(nlayers - 1):
        dims.append((dim1, dim1 // 2))
        dim1 = dim1 // 2
    dims.append((dim1, out_dim))

    for (fan_in, fan_out) in dims:
        key, kw, kb = jax.random.split(key, 3)
        bound = 1.0 / jnp.sqrt(fan_in)
        w = jax.random.uniform(kw, (fan_out, fan_in), jnp.float32, -bound, bound)
        b = jax.random.uniform(kb, (fan_out,), jnp.float32, -bound, bound)
        params.extend([w, b])
    return params


def prepare_params(params):
    """One-time layout prep (do NOT call per forward).

    Hidden layers: W -> W.T ([in, out]) so the hot path is h @ W; biases -> [1, out].
    Last layer: keep torch layout [out_dim, d_in] (consumed by dot_general with a
    transposed-RHS contraction); bias -> [out_dim, 1].
    """
    n_linear = len(params) // 2
    prepped = []
    for i in range(n_linear):
        w = jnp.asarray(params[2 * i], jnp.float32)
        b = jnp.asarray(params[2 * i + 1], jnp.float32)
        if i < n_linear - 1:
            prepped.append(w.T)                 # [d_in, d_out]
            prepped.append(b.reshape(1, -1))    # [1, d_out]
        else:
            prepped.append(w)                   # [out_dim, d_in]
            prepped.append(b.reshape(-1, 1))    # [out_dim, 1]
    return prepped


def _choose_tile_b(batch, per_row_bytes, resident_bytes):
    """Largest batch tile that keeps the working set under the VMEM budget."""
    usable = max(_TILE_VMEM_BUDGET - resident_bytes, 1 * 1024 * 1024)
    max_rows = max(_LANE, min(_TILE_CAP, usable // max(per_row_bytes, 1)))
    full = _round_up(batch, _SUBLANE)
    if full <= max_rows:
        return full                              # single tile == full (padded) batch
    # Multiple tiles: output block puts TILE_B on the lane axis -> multiple of 128.
    return max(_LANE, (max_rows // _LANE) * _LANE)


def mlp_forward(x, prepared_params):
    """x: [batch, in_dim] float32. prepared_params: output of prepare_params()."""
    batch, in_dim = x.shape
    n_linear = len(prepared_params) // 2
    n_hidden = n_linear - 1
    out_dim = prepared_params[-1].shape[0]       # b_last is [out_dim, 1]

    # VMEM budgeting: resident weights (x2 for Pallas buffering) + per-row cost of
    # double-buffered x / out blocks and fp32 layer intermediates.
    hidden_out_dims = [prepared_params[2 * i].shape[1] for i in range(n_hidden)]
    per_row_bytes = 4 * (2 * in_dim + 2 * out_dim + in_dim + sum(hidden_out_dims) + out_dim)
    resident_bytes = 2 * sum(int(p.size) * 4 for p in prepared_params)
    tile_b = _choose_tile_b(batch, per_row_bytes, resident_bytes)

    batch_padded = _round_up(batch, tile_b)
    if batch_padded != batch:
        x = jnp.pad(x, ((0, batch_padded - batch), (0, 0)))

    grid = (batch_padded // tile_b,)

    in_specs = [pl.BlockSpec((tile_b, in_dim), lambda i: (i, 0))]
    for p in prepared_params:
        # Constant index_map -> weights/biases stay VMEM-resident across the grid.
        in_specs.append(pl.BlockSpec(p.shape, lambda i: (0, 0)))
    out_specs = pl.BlockSpec((out_dim, tile_b), lambda i: (0, i))   # batch on lanes

    out_t = pl.pallas_call(
        functools.partial(_mlp_kernel, n_hidden),
        grid=grid,
        in_specs=in_specs,
        out_specs=out_specs,
        out_shape=jax.ShapeDtypeStruct((out_dim, batch_padded), jnp.float32),
        compiler_params=pltpu.CompilerParams(
            dimension_semantics=("parallel",),       # megacore split on v7x
            vmem_limit_bytes=_VMEM_LIMIT_BYTES,
        ),
    )(x, *prepared_params)

    out_t = out_t[:, :batch]
    # forward() ends with .squeeze(-1): only drops the dim if it is size 1.
    if out_dim == 1:
        return out_t.reshape(batch)
    return out_t.T


def _ref_forward(x, params):
    """Pure-JAX reference (eval-mode dropout = identity)."""
    h = x
    n_linear = len(params) // 2
    for i in range(n_linear):
        w, b = params[2 * i], params[2 * i + 1]
        if i < n_linear - 1:
            h = jnp.maximum(h, 0.0)
        h = h @ w.T + b
    return jnp.squeeze(h, -1) if h.shape[-1] == 1 else h


if __name__ == "__main__":
    # Small shapes implied by the module: per-row embedding of size in_dim.
    batch, in_dim, out_dim, nlayers = 8, 32, 1, 3   # 32 -> 16 -> 8 -> 1

    key = jax.random.PRNGKey(0)
    key, kx = jax.random.split(key)
    x = jax.random.normal(kx, (batch, in_dim), jnp.float32)

    params = init_mlp_params(key, in_dim, out_dim, nlayers)
    prepared = prepare_params(params)            # one-time layout prep

    fwd = jax.jit(mlp_forward)
    y = fwd(x, prepared)
    jax.block_until_ready(y)

    assert y.shape == (batch,), y.shape          # out_dim=1 squeezed away
    y_ref = _ref_forward(x, params)
    assert jnp.allclose(y, y_ref, atol=1e-5, rtol=1e-5), (y, y_ref)
    print("KERNEL_OK")
</pallas_src>

<mosaic_0001>
module attributes {stable_mosaic.version = 11 : i64} {
  func.func @_mlp_kernel(%arg0: i32, %arg1: memref<8x32xf32, #tpu.memory_space<vmem>>, %arg2: memref<32x16xf32, #tpu.memory_space<vmem>>, %arg3: memref<1x16xf32, #tpu.memory_space<vmem>>, %arg4: memref<16x8xf32, #tpu.memory_space<vmem>>, %arg5: memref<1x8xf32, #tpu.memory_space<vmem>>, %arg6: memref<1x8xf32, #tpu.memory_space<vmem>>, %arg7: memref<1x1xf32, #tpu.memory_space<vmem>>, %arg8: memref<1x8xf32, #tpu.memory_space<vmem>>) attributes {dimension_semantics = [#tpu.dimension_semantics<parallel>], iteration_bounds = array<i64: 1>, scalar_prefetch = 0 : i64, scratch_operands = 0 : i64, tpu.core_type = #tpu.core_type<tc>, window_params = [{transform_indices = @transform_0, window_bounds = array<i64: 8, 32>}, {pipeline_mode = #tpu.pipeline_mode<synchronous>, transform_indices = @transform_1, window_bounds = array<i64: 32, 16>}, {pipeline_mode = #tpu.pipeline_mode<synchronous>, transform_indices = @transform_2, window_bounds = array<i64: 1, 16>}, {pipeline_mode = #tpu.pipeline_mode<synchronous>, transform_indices = @transform_3, window_bounds = array<i64: 16, 8>}, {pipeline_mode = #tpu.pipeline_mode<synchronous>, transform_indices = @transform_4, window_bounds = array<i64: 1, 8>}, {pipeline_mode = #tpu.pipeline_mode<synchronous>, transform_indices = @transform_5, window_bounds = array<i64: 1, 8>}, {pipeline_mode = #tpu.pipeline_mode<synchronous>, transform_indices = @transform_6, window_bounds = array<i64: 1, 1>}, {transform_indices = @transform_7, window_bounds = array<i64: 1, 8>}]} {
    %c0 = arith.constant 0 : index
    %c0_0 = arith.constant 0 : index
    %0 = vector.load %arg1[%c0, %c0_0] : memref<8x32xf32, #tpu.memory_space<vmem>>, vector<8x32xf32>
    %c0_1 = arith.constant 0 : index
    %c0_2 = arith.constant 0 : index
    %1 = vector.load %arg2[%c0_1, %c0_2] : memref<32x16xf32, #tpu.memory_space<vmem>>, vector<32x16xf32>
    %c0_3 = arith.constant 0 : index
    %c0_4 = arith.constant 0 : index
    %2 = vector.load %arg3[%c0_3, %c0_4] : memref<1x16xf32, #tpu.memory_space<vmem>>, vector<1x16xf32>
    %cst = arith.constant 0.000000e+00 : f32
    %3 = vector.broadcast %cst : f32 to vector<8x32xf32>
    %4 = arith.maximumf %0, %3 : vector<8x32xf32>
    %cst_5 = arith.constant dense<0.000000e+00> : vector<8x16xf32>
    %5 = tpu.matmul %4, %1, %cst_5 {dimension_numbers = #tpu.dot_dimension_numbers<[1], [0], [0], [1], [0, 0, 1, 1], [], []>} : vector<8x32xf32>, vector<32x16xf32>, vector<8x16xf32> -> vector<8x16xf32>
    %6 = vector.broadcast %2 : vector<1x16xf32> to vector<8x16xf32>
    %7 = arith.addf %5, %6 : vector<8x16xf32>
    %c0_6 = arith.constant 0 : index
    %c0_7 = arith.constant 0 : index
    %8 = vector.load %arg4[%c0_6, %c0_7] : memref<16x8xf32, #tpu.memory_space<vmem>>, vector<16x8xf32>
    %c0_8 = arith.constant 0 : index
    %c0_9 = arith.constant 0 : index
    %9 = vector.load %arg5[%c0_8, %c0_9] : memref<1x8xf32, #tpu.memory_space<vmem>>, vector<1x8xf32>
    %cst_10 = arith.constant 0.000000e+00 : f32
    %10 = vector.broadcast %cst_10 : f32 to vector<8x16xf32>
    %11 = arith.maximumf %7, %10 : vector<8x16xf32>
    %cst_11 = arith.constant dense<0.000000e+00> : vector<8x8xf32>
    %12 = tpu.matmul %11, %8, %cst_11 {dimension_numbers = #tpu.dot_dimension_numbers<[1], [0], [0], [1], [0, 0, 1, 1], [], []>} : vector<8x16xf32>, vector<16x8xf32>, vector<8x8xf32> -> vector<8x8xf32>
    %13 = vector.broadcast %9 : vector<1x8xf32> to vector<8x8xf32>
    %14 = arith.addf %12, %13 : vector<8x8xf32>
    %c0_12 = arith.constant 0 : index
    %c0_13 = arith.constant 0 : index
    %15 = vector.load %arg6[%c0_12, %c0_13] : memref<1x8xf32, #tpu.memory_space<vmem>>, vector<1x8xf32>
    %c0_14 = arith.constant 0 : index
    %c0_15 = arith.constant 0 : index
    %16 = vector.load %arg7[%c0_14, %c0_15] : memref<1x1xf32, #tpu.memory_space<vmem>>, vector<1x1xf32>
    %cst_16 = arith.constant dense<0.000000e+00> : vector<1x8xf32>
    %17 = tpu.matmul %15, %14, %cst_16 {dimension_numbers = #tpu.dot_dimension_numbers<[1], [1], [0], [0], [0, 0, 1, 0], [], []>} : vector<1x8xf32>, vector<8x8xf32>, vector<1x8xf32> -> vector<1x8xf32>
    %18 = vector.broadcast %16 : vector<1x1xf32> to vector<1x8xf32>
    %19 = arith.addf %17, %18 : vector<1x8xf32>
    %c0_17 = arith.constant 0 : index
    %c0_18 = arith.constant 0 : index
    %20 = vector.load %arg8[%c0_17, %c0_18] : memref<1x8xf32, #tpu.memory_space<vmem>>, vector<1x8xf32>
    tpu.vector_store %arg8[%c0_17, %c0_18], %19 {strides = array<i32>} : memref<1x8xf32, #tpu.memory_space<vmem>>, vector<1x8xf32>,
    return
  }
  func.func @transform_0(%arg0: i32) -> (i32, i32) {
    %c0_i32 = arith.constant 0 : i32
    %c0_i32_0 = arith.constant 0 : i32
    return %arg0, %c0_i32 : i32, i32
  }
  func.func @transform_1(%arg0: i32) -> (i32, i32) {
    %c0_i32 = arith.constant 0 : i32
    %c0_i32_0 = arith.constant 0 : i32
    %c0_i32_1 = arith.constant 0 : i32
    return %c0_i32, %c0_i32_0 : i32, i32
  }
  func.func @transform_2(%arg0: i32) -> (i32, i32) {
    %c0_i32 = arith.constant 0 : i32
    %c0_i32_0 = arith.constant 0 : i32
    %c0_i32_1 = arith.constant 0 : i32
    return %c0_i32, %c0_i32_0 : i32, i32
  }
  func.func @transform_3(%arg0: i32) -> (i32, i32) {
    %c0_i32 = arith.constant 0 : i32
    %c0_i32_0 = arith.constant 0 : i32
    %c0_i32_1 = arith.constant 0 : i32
    return %c0_i32, %c0_i32_0 : i32, i32
  }
  func.func @transform_4(%arg0: i32) -> (i32, i32) {
    %c0_i32 = arith.constant 0 : i32
    %c0_i32_0 = arith.constant 0 : i32
    %c0_i32_1 = arith.constant 0 : i32
    return %c0_i32, %c0_i32_0 : i32, i32
  }
  func.func @transform_5(%arg0: i32) -> (i32, i32) {
    %c0_i32 = arith.constant 0 : i32
    %c0_i32_0 = arith.constant 0 : i32
    %c0_i32_1 = arith.constant 0 : i32
    return %c0_i32, %c0_i32_0 : i32, i32
  }
  func.func @transform_6(%arg0: i32) -> (i32, i32) {
    %c0_i32 = arith.constant 0 : i32
    %c0_i32_0 = arith.constant 0 : i32
    %c0_i32_1 = arith.constant 0 : i32
    return %c0_i32, %c0_i32_0 : i32, i32
  }
  func.func @transform_7(%arg0: i32) -> (i32, i32) {
    %c0_i32 = arith.constant 0 : i32
    %c0_i32_0 = arith.constant 0 : i32
    return %c0_i32, %arg0 : i32, i32
  }
}

</mosaic_0001>

<bundles_post_ra>
// kernel: mlp_forward.1
= control target key start
LH: loop header
LB: loop body
LE: loop exit
PB: predicated region body
PF: predicated region fallthrough
CT: control target
= control target key end

     0   :  { %s475_s0 = inlined_call_operand.vmem [shape: f32[8,32], index: 0, kind: input, shape index: {}]   ;;  %s476_s1 = inlined_call_operand.vmem [shape: f32[32,16], index: 1, kind: input, shape index: {}]   ;;  %s477_s2 = inlined_call_operand.vmem [shape: f32[1,16], index: 2, kind: input, shape index: {}]   ;;  %s478_s3 = inlined_call_operand.vmem [shape: f32[16,8], index: 3, kind: input, shape index: {}]   ;;  %s479_s4 = inlined_call_operand.vmem [shape: f32[1,8], index: 4, kind: input, shape index: {}]   ;;  %s480_s5 = inlined_call_operand.vmem [shape: f32[1,8], index: 5, kind: input, shape index: {}]   ;;  %s481_s6 = inlined_call_operand.<no memory space> [shape: f32[1,1], index: 6, kind: input, shape index: {}]   ;;  %s482_s7 = inlined_call_operand.hbm [shape: f32[1,8], index: 7, kind: output, shape index: {}]  }
   0x1   :  { %v12_v0 = vstv %s481_s6 }
   0x2   :  { %13 = vst [vmem:[#allocation2] sm:$0x1] %v12_v0 }
   0x3   :  { %v30_v1 = vld [vmem:[%s476_s1] sm:$0xff]  ;;  %v31_v2 = vld [vmem:[%s476_s1 + $0x8] sm:$0xff]  ;;  %v32_v3 = vld [vmem:[%s476_s1 + $0x10] sm:$0xff]  ;;  %v382_v4 = vmov 0.0|0.0   ;;  %vm383_vm0 = vmmov 0   ;;  %v384_v7 = vmov 0.0  }
   0x4   :  { %343 = vmatprep.subr.bf16.mxu0 %v382_v4  ;;  %v344_v5 = vpack.c.bf16 %v31_v2, %v30_v1  ;;  %v33_v6 = vld [vmem:[%s476_s1 + $0x18] sm:$0xff]  ;;  %328 = vmatprep.mubr.msk.f32.mxu0 %vm383_vm0, %v384_v7 }
   0x5   :  { %349 = vmatprep.subr.bf16.mxu1 %v382_v4  ;;  %335 = vmatprep.mubr.msk.f32.mxu1 %vm383_vm0, %v384_v7 }
   0x6   :  { %14 = vsyncpa [#allocation4], 0  ;;  %345 = vmatpush3.bf16.msra.mxu0 %v344_v5  ;;  %v347_v8 = vpack.c.bf16 %v33_v6, %v32_v3  ;;  %v29_v9 = vld [vmem:[%s475_s0] sm:$0xff]  ;;  %vm42_vm1 = vcmask 261120   ;;  %v117_v12 = vld [vmem:[%s478_s3 + $0x8] sm:$0xff]  ;;  %vm126_vm2 = vcmask 130048   ;;  %v207_v26 = vlaneseq }
   0x7   :  { %346 = vmatprep.subr.bf16.mxu0 %v382_v4  ;;  %v35_v10 = vmax.f32 %v29_v9, 0.0  ;;  %v116_v11 = vld [vmem:[%s478_s3] sm:$0xff]  ;;  %v385_v20 = vmov 0   ;;  %vm211_vm3 = vcmask 64512   ;;  %s386_s18 = smov [#allocation3]   ;;  %vm288_vm4 = vcmask 57344  }
   0x8   :  { %v350_v13 = vpack.c.bf16 %v117_v12, %v116_v11  ;;  %v304_v14 = vld [vmem:[%s477_s2] ss:$0 sm:$0xff]  ;;  %357 = vset.pattern.permute.xlu0 %v385_v20  ;;  %v208_v27 = vshrl.u32 %v207_v26, 7  ;;  %s296_s19 = sshll.u32 %s386_s18, 4  ;;  %s297_s19 = int_to_ptr.vmem [resolvable:$true] %s296_s19 }
   0x9   :  { %v201_v19 = vld [vmem:[#allocation2] sm:$0x1]  ;;  %s362_s20 = scalar_lea.vmem %s297_s19, 32  ;;  %p363_p1 = scmp.lt.s32.totalorder %s297_s19, %s297_s19 }
   0xa   :  { %348 = vmatpush3.bf16.msra.mxu0 %v347_v8  ;;  %351 = vmatpush3.bf16.msra.mxu1 %v350_v13  ;;  %v306_v21 = vld [vmem:[%s479_s4] ss:$0 sm:$0xff]  ;;  %v209_v28 = vsub.s32 0, %v208_v27  ;;  %s358_s4 = scalar_lea.vmem %s297_s19, 16 }
   0xb   :  { %338 = vmatprep.subr.mxu1 %v384_v7  ;;  %204 = vperm.xlu0 %357, %v201_v19   ;;  %v200_v25 = vld [vmem:[%s480_s5] sm:$0x1]  ;;  %p359_p0 = scmp.ne.s32.totalorder %s297_s19, %s358_s4  ;;  %p364_p2 = scmp.lt.s32.totalorder %s362_s20, %s358_s4 }
   0xd   :  { %329 = vmatmul.mubr.msk.f32.vlgmr.msra.gmra.mrb[0].mxu0 %vm42_vm1, %v35_v10  ;;  %p365_p3 = por %p364_p2, %p363_p1 }
   0xf   :  { %p366_p4 = pnand %p365_p3, %p359_p0 }
  0x8a   :  { %v205_v29 = vpop.permute.xlu0 %204 }
  0x8b   :  { %v210_v30 = vrot.slane %v205_v29, %v209_v28 }
  0xe0   :  { %v112_v15 = vpop.f32.mrb[0].mxu0 }
  0xe1   :  { %v113_v16 = vadd.f32 %v304_v14, %v112_v15  ;;  %v330_v17 = vpop.f32.mrb[1].mxu0 }
  0xe3   :  { %v119_v18 = vmax.f32 %v113_v16, 0.0 }
  0xe5   :  { %336 = vmatmul.mubr.msk.f32.vlgmr.msra.gmra.mrb[0].mxu1 %vm126_vm2, %v119_v18 }
  0xe6   :  { %340 = vmatprep.mubr.msk.f32.mxu1 %vm383_vm0, %v384_v7 }
 0x1b8   :  { %v196_v22 = vpop.f32.mrb[0].mxu1 }
 0x1b9   :  { %v197_v23 = vadd.f32 %v306_v21, %v196_v22  ;;  %v337_v24 = vpop.f32.mrb[1].mxu1 }
 0x1bb   :  { %339 = vmatpush3.xpose.msk.msra.mxu1 %vm211_vm3, %v197_v23 }
 0x1be   :  { %341 = vmatmul.mubr.msk.f32.vlgmr.msra.gmra.mrb[2].mxu1 %vm211_vm3, %v200_v25 }
 0x291   :  { %v284_v31 = vpop.f32.mrb[2].mxu1 }
 0x292   :  { %v285_v32 = vadd.f32 %v284_v31, %v210_v30  ;;  %v342_v33 = vpop.f32.mrb[3].mxu1 }
 0x294   :  { %289 = vst.msk [vmem:[#allocation3] sm:$0x1] %vm288_vm4, %v285_v32 }
 0x295   :  { %369 = shalt.err (!%p366_p4)
}
 0x296   :  { %s370_s22 = scalar_lea.hbm %s482_s7, 16 }
 0x297   :  { %p371_p5 = scmp.ne.s32.totalorder %s482_s7, %s370_s22  ;;  %p374_p6 = scmp.lt.u32.totalorder %s370_s22, %s482_s7 }
 0x299   :  { %p376_p7 = pnand %p374_p6, %p371_p5 }
 0x29b   :  { %379 = shalt.err (!%p376_p7)
}
 0x29c   :  { %299 = dma.vmem_to_hbm [thread:$0]  %s297_s19, 16, %s482_s7, [#allocation4]  }
 0x29d   :  { %380 = dma.done.wait [#allocation4], 16  }
 0x29e   :  { %381 = vsyncadd [#allocation4], 4294967280 }
 0x29f   :  { %303 = vsyncpa [#allocation4], 1 }

</bundles_post_ra>
